<compile_context>
chip_gen: v6e
topology: v6e:2x2x1
jax: 0.10.0
libtpu: 0.0.40
codegen_flags: <defaults>
</compile_context>

<pallas_src>
import jax
import jax.numpy as jnp
from jax.experimental import pallas as pl
from jax.experimental.pallas import tpu as pltpu


def _cross_attn_kernel(y_ref, x_ref, wq_ref, bq_ref, wk_ref, bk_ref,
                       wv_ref, bv_ref, o_ref):
    bt, lq, cp = y_ref.shape
    _, lk, _ = x_ref.shape

    # Flatten batch*seq so the projections are single, MXU-filling matmuls.
    y2 = y_ref[...].reshape(bt * lq, cp)        # (Bt*Lq, Cp)
    x2 = x_ref[...].reshape(bt * lk, cp)        # (Bt*Lk, Cp)

    # Projections (fp32 accumulation). The attention scale is pre-folded into
    # wq/bq, so no extra VALU multiply on the (Lq, Lk) tile is needed below.
    q = (jnp.dot(y2, wq_ref[...], preferred_element_type=jnp.float32)
         + bq_ref[...]).reshape(bt, lq, -1)     # (Bt, Lq, Chp), already scaled
    k = (jnp.dot(x2, wk_ref[...], preferred_element_type=jnp.float32)
         + bk_ref[...]).reshape(bt, lk, -1)     # (Bt, Lk, Chp)
    v = (jnp.dot(x2, wv_ref[...], preferred_element_type=jnp.float32)
         + bv_ref[...]).reshape(bt, lk, cp)     # (Bt, Lk, Cp)

    # Batched scaled dot-product attention; contraction on the last axes of q
    # and k (trans_b-style dot_general -> no materialized transpose).
    dots = jnp.einsum("bqd,bkd->bqk", q, k,
                      preferred_element_type=jnp.float32)     # (Bt, Lq, Lk)
    dots = dots - jnp.max(dots, axis=-1, keepdims=True)       # stable softmax
    p = jnp.exp(dots)
    # Exact division: the denominator is only (Bt, Lq, 1); the approx EUP
    # reciprocal here previously cost ~8e-3 absolute error for zero real gain.
    attn = p / jnp.sum(p, axis=-1, keepdims=True)

    out = jnp.einsum("bqk,bkd->bqd", attn, v,
                     preferred_element_type=jnp.float32)      # (Bt, Lq, Cp)
    o_ref[...] = out.astype(o_ref.dtype)


def _round_up(x, m):
    return ((x + m - 1) // m) * m


def cross_attn(y, x, params):
    """y: (B, Lq, C), x: (B, Lk, C). params hold (in, out)-layout weights."""
    B, Lq, C = y.shape
    Bx, Lk, Cx = x.shape
    assert Bx == B and Cx == C
    Ch = C // 2
    scale = float(Ch) ** (-0.5)

    LANE = 128
    Cp = _round_up(C, LANE)
    Chp = _round_up(Ch, LANE)

    dt = y.dtype
    itemsize = jnp.dtype(dt).itemsize

    # Fold the attention scale into the query projection (one-time, host/XLA
    # side) and zero-pad all weights/biases to lane-dense shapes. Zero padding
    # contributes exactly zero to every contraction, so the valid output slice
    # matches the unpadded computation.
    wq = jnp.pad((params["wq"] * scale).astype(dt),
                 ((0, Cp - C), (0, Chp - Ch)))
    bq = jnp.pad((params["bq"] * scale).astype(dt), ((0, 0), (0, Chp - Ch)))
    wk = jnp.pad(params["wk"].astype(dt), ((0, Cp - C), (0, Chp - Ch)))
    bk = jnp.pad(params["bk"].astype(dt), ((0, 0), (0, Chp - Ch)))
    wv = jnp.pad(params["wv"].astype(dt), ((0, Cp - C), (0, Cp - C)))
    bv = jnp.pad(params["bv"].astype(dt), ((0, 0), (0, Cp - C)))

    # Batch-tile selection: as many batch elements per grid step as a modest
    # VMEM budget allows (amortizes the ~0.35us/step pipeline overhead and
    # fills the MXU M-dimension), but keep >=2 grid steps when B>=2 so both
    # v7x TensorCores get work via the "parallel" axis.
    per_b_io = 2 * (Lq * Cp + Lk * Cp + Lq * Cp) * itemsize   # dbl-buffered tiles
    per_b_tmp = (Lq * Chp + Lk * Chp + Lk * Cp + 2 * Lq * Lk + Lq * Cp) * 4
    budget = 6 * 1024 * 1024
    bt = int(max(1, min(B, budget // max(1, per_b_io + per_b_tmp))))
    if B >= 2:
        bt = min(bt, (B + 1) // 2)
    nb = pl.cdiv(B, bt)
    Bp = nb * bt

    y_p = jnp.pad(y, ((0, Bp - B), (0, 0), (0, Cp - C)))
    x_p = jnp.pad(x, ((0, Bp - B), (0, 0), (0, Cp - C)))

    # Raise the scoped-VMEM limit only when the estimated footprint needs it
    # (relevant for production-sized C on v7x's 64 MiB VMEM).
    w_bytes = 2 * (2 * Cp * Chp + Cp * Cp + 2 * Chp + Cp) * itemsize
    est = w_bytes + bt * (per_b_io + per_b_tmp)
    cp_kwargs = dict(dimension_semantics=("parallel",))
    if est > 24 * 1024 * 1024:
        cp_kwargs["vmem_limit_bytes"] = int(min(est * 3 // 2,
                                                64 * 1024 * 1024))

    out = pl.pallas_call(
        _cross_attn_kernel,
        out_shape=jax.ShapeDtypeStruct((Bp, Lq, Cp), dt),
        grid_spec=pltpu.PrefetchScalarGridSpec(
            num_scalar_prefetch=0,
            grid=(nb,),
            in_specs=[
                pl.BlockSpec((bt, Lq, Cp), lambda b: (b, 0, 0)),   # y
                pl.BlockSpec((bt, Lk, Cp), lambda b: (b, 0, 0)),   # x
                pl.BlockSpec((Cp, Chp), lambda b: (0, 0)),         # wq (scaled)
                pl.BlockSpec((1, Chp), lambda b: (0, 0)),          # bq (scaled)
                pl.BlockSpec((Cp, Chp), lambda b: (0, 0)),         # wk
                pl.BlockSpec((1, Chp), lambda b: (0, 0)),          # bk
                pl.BlockSpec((Cp, Cp), lambda b: (0, 0)),          # wv
                pl.BlockSpec((1, Cp), lambda b: (0, 0)),           # bv
            ],
            out_specs=pl.BlockSpec((bt, Lq, Cp), lambda b: (b, 0, 0)),
        ),
        compiler_params=pltpu.CompilerParams(**cp_kwargs),
    )(y_p, x_p, wq, bq, wk, bk, wv, bv)

    return out[:B, :, :C]


def init_params(key, in_channels):
    """Deterministic init mirroring the module's __init__ shapes.

    PyTorch nn.Linear stores weight as (out, in); we store the transposed
    (in, out) layout so the kernel computes x @ W directly.
    """
    C = in_channels
    Ch = C // 2
    k_q, k_k, k_v, k_bq, k_bk, k_bv = jax.random.split(key, 6)
    std_qk = (2.0 / Ch) ** 0.5
    std_v = (2.0 / C) ** 0.5
    params = {
        "wq": (jax.random.normal(k_q, (C, Ch)) * std_qk).astype(jnp.float32),
        "wk": (jax.random.normal(k_k, (C, Ch)) * std_qk).astype(jnp.float32),
        "wv": (jax.random.normal(k_v, (C, C)) * std_v).astype(jnp.float32),
        # nn.Linear biases default to uniform(-1/sqrt(in), 1/sqrt(in));
        # deterministic synthetic values here.
        "bq": (jax.random.uniform(k_bq, (1, Ch), minval=-1, maxval=1)
               / (C ** 0.5)).astype(jnp.float32),
        "bk": (jax.random.uniform(k_bk, (1, Ch), minval=-1, maxval=1)
               / (C ** 0.5)).astype(jnp.float32),
        "bv": (jax.random.uniform(k_bv, (1, C), minval=-1, maxval=1)
               / (C ** 0.5)).astype(jnp.float32),
    }
    return params


def cross_attn_ref(y, x, params):
    """Pure-JAX reference of the PyTorch forward."""
    C = y.shape[-1]
    scale = (C // 2) ** (-0.5)
    q = y @ params["wq"] + params["bq"]
    k = x @ params["wk"] + params["bk"]
    v = x @ params["wv"] + params["bv"]
    dots = jnp.einsum("bqc,bkc->bqk", q, k) * scale
    attn = jax.nn.softmax(dots, axis=-1)
    return jnp.einsum("bqk,bkc->bqc", attn, v)


if __name__ == "__main__":
    key = jax.random.PRNGKey(0)
    k_p, k_y, k_x = jax.random.split(key, 3)

    B, Lq, Lk, C = 2, 8, 16, 32
    params = init_params(k_p, C)
    y = jax.random.normal(k_y, (B, Lq, C), dtype=jnp.float32)
    x = jax.random.normal(k_x, (B, Lk, C), dtype=jnp.float32)

    out = cross_attn(y, x, params)
    out = jax.block_until_ready(out)

    ref = cross_attn_ref(y, x, params)
    assert out.shape == (B, Lq, C)
    # Softmax is now exact; remaining differences are only matmul
    # accumulation-order rounding.
    err = jnp.max(jnp.abs(out - ref))
    assert jnp.allclose(out, ref, atol=1e-3, rtol=1e-3), f"max abs err {err}"

    print("KERNEL_OK")
</pallas_src>

<mosaic_0001>
module attributes {stable_mosaic.version = 11 : i64} {
  func.func @_cross_attn_kernel(%arg0: i32, %arg1: memref<1x8x128xf32, #tpu.memory_space<vmem>>, %arg2: memref<1x16x128xf32, #tpu.memory_space<vmem>>, %arg3: memref<128x128xf32, #tpu.memory_space<vmem>>, %arg4: memref<1x128xf32, #tpu.memory_space<vmem>>, %arg5: memref<128x128xf32, #tpu.memory_space<vmem>>, %arg6: memref<1x128xf32, #tpu.memory_space<vmem>>, %arg7: memref<128x128xf32, #tpu.memory_space<vmem>>, %arg8: memref<1x128xf32, #tpu.memory_space<vmem>>, %arg9: memref<1x8x128xf32, #tpu.memory_space<vmem>>) attributes {dimension_semantics = [#tpu.dimension_semantics<parallel>], iteration_bounds = array<i64: 2>, scalar_prefetch = 0 : i64, scratch_operands = 0 : i64, tpu.core_type = #tpu.core_type<tc>, window_params = [{transform_indices = @transform_0, window_bounds = array<i64: 1, 8, 128>}, {transform_indices = @transform_1, window_bounds = array<i64: 1, 16, 128>}, {pipeline_mode = #tpu.pipeline_mode<synchronous>, transform_indices = @transform_2, window_bounds = array<i64: 128, 128>}, {pipeline_mode = #tpu.pipeline_mode<synchronous>, transform_indices = @transform_3, window_bounds = array<i64: 1, 128>}, {pipeline_mode = #tpu.pipeline_mode<synchronous>, transform_indices = @transform_4, window_bounds = array<i64: 128, 128>}, {pipeline_mode = #tpu.pipeline_mode<synchronous>, transform_indices = @transform_5, window_bounds = array<i64: 1, 128>}, {pipeline_mode = #tpu.pipeline_mode<synchronous>, transform_indices = @transform_6, window_bounds = array<i64: 128, 128>}, {pipeline_mode = #tpu.pipeline_mode<synchronous>, transform_indices = @transform_7, window_bounds = array<i64: 1, 128>}, {transform_indices = @transform_8, window_bounds = array<i64: 1, 8, 128>}]} {
    %c0 = arith.constant 0 : index
    %c0_0 = arith.constant 0 : index
    %c0_1 = arith.constant 0 : index
    %0 = vector.load %arg1[%c0, %c0_0, %c0_1] : memref<1x8x128xf32, #tpu.memory_space<vmem>>, vector<1x8x128xf32>
    %1 = vector.shape_cast %0 : vector<1x8x128xf32> to vector<8x128xf32>
    %c0_2 = arith.constant 0 : index
    %c0_3 = arith.constant 0 : index
    %c0_4 = arith.constant 0 : index
    %2 = vector.load %arg2[%c0_2, %c0_3, %c0_4] : memref<1x16x128xf32, #tpu.memory_space<vmem>>, vector<1x16x128xf32>
    %3 = vector.shape_cast %2 : vector<1x16x128xf32> to vector<16x128xf32>
    %c0_5 = arith.constant 0 : index
    %c0_6 = arith.constant 0 : index
    %4 = vector.load %arg3[%c0_5, %c0_6] : memref<128x128xf32, #tpu.memory_space<vmem>>, vector<128x128xf32>
    %cst = arith.constant dense<0.000000e+00> : vector<8x128xf32>
    %5 = tpu.matmul %1, %4, %cst {dimension_numbers = #tpu.dot_dimension_numbers<[1], [0], [0], [1], [0, 0, 1, 1], [], []>} : vector<8x128xf32>, vector<128x128xf32>, vector<8x128xf32> -> vector<8x128xf32>
    %c0_7 = arith.constant 0 : index
    %c0_8 = arith.constant 0 : index
    %6 = vector.load %arg4[%c0_7, %c0_8] : memref<1x128xf32, #tpu.memory_space<vmem>>, vector<1x128xf32>
    %7 = vector.broadcast %6 : vector<1x128xf32> to vector<8x128xf32>
    %8 = arith.addf %5, %7 : vector<8x128xf32>
    %9 = vector.shape_cast %8 : vector<8x128xf32> to vector<1x8x128xf32>
    %c0_9 = arith.constant 0 : index
    %c0_10 = arith.constant 0 : index
    %10 = vector.load %arg5[%c0_9, %c0_10] : memref<128x128xf32, #tpu.memory_space<vmem>>, vector<128x128xf32>
    %cst_11 = arith.constant dense<0.000000e+00> : vector<16x128xf32>
    %11 = tpu.matmul %3, %10, %cst_11 {dimension_numbers = #tpu.dot_dimension_numbers<[1], [0], [0], [1], [0, 0, 1, 1], [], []>} : vector<16x128xf32>, vector<128x128xf32>, vector<16x128xf32> -> vector<16x128xf32>
    %c0_12 = arith.constant 0 : index
    %c0_13 = arith.constant 0 : index
    %12 = vector.load %arg6[%c0_12, %c0_13] : memref<1x128xf32, #tpu.memory_space<vmem>>, vector<1x128xf32>
    %13 = vector.broadcast %12 : vector<1x128xf32> to vector<16x128xf32>
    %14 = arith.addf %11, %13 : vector<16x128xf32>
    %15 = vector.shape_cast %14 : vector<16x128xf32> to vector<1x16x128xf32>
    %c0_14 = arith.constant 0 : index
    %c0_15 = arith.constant 0 : index
    %16 = vector.load %arg7[%c0_14, %c0_15] : memref<128x128xf32, #tpu.memory_space<vmem>>, vector<128x128xf32>
    %cst_16 = arith.constant dense<0.000000e+00> : vector<16x128xf32>
    %17 = tpu.matmul %3, %16, %cst_16 {dimension_numbers = #tpu.dot_dimension_numbers<[1], [0], [0], [1], [0, 0, 1, 1], [], []>} : vector<16x128xf32>, vector<128x128xf32>, vector<16x128xf32> -> vector<16x128xf32>
    %c0_17 = arith.constant 0 : index
    %c0_18 = arith.constant 0 : index
    %18 = vector.load %arg8[%c0_17, %c0_18] : memref<1x128xf32, #tpu.memory_space<vmem>>, vector<1x128xf32>
    %19 = vector.broadcast %18 : vector<1x128xf32> to vector<16x128xf32>
    %20 = arith.addf %17, %19 : vector<16x128xf32>
    %21 = vector.shape_cast %20 : vector<16x128xf32> to vector<1x16x128xf32>
    "tpu.trace_start"() <{level = 10 : i32, message = "bqd,bkd->bqk"}> : () -> ()
    %cst_19 = arith.constant dense<0.000000e+00> : vector<1x8x16xf32>
    %22 = tpu.matmul %9, %15, %cst_19 {dimension_numbers = #tpu.dot_dimension_numbers<[2], [2], [1], [1], [0, 0, 0, 1, 1, 1], [0], [0]>} : vector<1x8x128xf32>, vector<1x16x128xf32>, vector<1x8x16xf32> -> vector<1x8x16xf32>
    "tpu.trace_stop"() : () -> ()
    %cst_20 = arith.constant dense<0xFF800000> : vector<1x8xf32>
    %23 = vector.multi_reduction <maximumf>, %22, %cst_20 [2] : vector<1x8x16xf32> to vector<1x8xf32>
    %24 = vector.shape_cast %23 : vector<1x8xf32> to vector<1x8x1xf32>
    %25 = vector.broadcast %24 : vector<1x8x1xf32> to vector<1x8x16xf32>
    %26 = arith.subf %22, %25 : vector<1x8x16xf32>
    %27 = math.exp %26 : vector<1x8x16xf32>
    %cst_21 = arith.constant dense<0.000000e+00> : vector<1x8xf32>
    %28 = vector.multi_reduction <add>, %27, %cst_21 [2] : vector<1x8x16xf32> to vector<1x8xf32>
    %29 = vector.shape_cast %28 : vector<1x8xf32> to vector<1x8x1xf32>
    %30 = vector.broadcast %29 : vector<1x8x1xf32> to vector<1x8x16xf32>
    %31 = arith.divf %27, %30 : vector<1x8x16xf32>
    "tpu.trace_start"() <{level = 10 : i32, message = "bqk,bkd->bqd"}> : () -> ()
    %cst_22 = arith.constant dense<0.000000e+00> : vector<1x8x128xf32>
    %32 = tpu.matmul %31, %21, %cst_22 {dimension_numbers = #tpu.dot_dimension_numbers<[2], [1], [1], [2], [0, 0, 0, 1, 1, 2], [0], [0]>} : vector<1x8x16xf32>, vector<1x16x128xf32>, vector<1x8x128xf32> -> vector<1x8x128xf32>
    "tpu.trace_stop"() : () -> ()
    %c0_23 = arith.constant 0 : index
    %c0_24 = arith.constant 0 : index
    %c0_25 = arith.constant 0 : index
    %33 = vector.load %arg9[%c0_23, %c0_24, %c0_25] : memref<1x8x128xf32, #tpu.memory_space<vmem>>, vector<1x8x128xf32>
    tpu.vector_store %arg9[%c0_23, %c0_24, %c0_25], %32 {strides = array<i32>} : memref<1x8x128xf32, #tpu.memory_space<vmem>>, vector<1x8x128xf32>,
    return
  }
  func.func @transform_0(%arg0: i32) -> (i32, i32, i32) {
    %c0_i32 = arith.constant 0 : i32
    %c0_i32_0 = arith.constant 0 : i32
    %c0_i32_1 = arith.constant 0 : i32
    return %arg0, %c0_i32, %c0_i32_0 : i32, i32, i32
  }
  func.func @transform_1(%arg0: i32) -> (i32, i32, i32) {
    %c0_i32 = arith.constant 0 : i32
    %c0_i32_0 = arith.constant 0 : i32
    %c0_i32_1 = arith.constant 0 : i32
    return %arg0, %c0_i32, %c0_i32_0 : i32, i32, i32
  }
  func.func @transform_2(%arg0: i32) -> (i32, i32) {
    %c0_i32 = arith.constant 0 : i32
    %c0_i32_0 = arith.constant 0 : i32
    %c0_i32_1 = arith.constant 0 : i32
    return %c0_i32, %c0_i32_0 : i32, i32
  }
  func.func @transform_3(%arg0: i32) -> (i32, i32) {
    %c0_i32 = arith.constant 0 : i32
    %c0_i32_0 = arith.constant 0 : i32
    %c0_i32_1 = arith.constant 0 : i32
    return %c0_i32, %c0_i32_0 : i32, i32
  }
  func.func @transform_4(%arg0: i32) -> (i32, i32) {
    %c0_i32 = arith.constant 0 : i32
    %c0_i32_0 = arith.constant 0 : i32
    %c0_i32_1 = arith.constant 0 : i32
    return %c0_i32, %c0_i32_0 : i32, i32
  }
  func.func @transform_5(%arg0: i32) -> (i32, i32) {
    %c0_i32 = arith.constant 0 : i32
    %c0_i32_0 = arith.constant 0 : i32
    %c0_i32_1 = arith.constant 0 : i32
    return %c0_i32, %c0_i32_0 : i32, i32
  }
  func.func @transform_6(%arg0: i32) -> (i32, i32) {
    %c0_i32 = arith.constant 0 : i32
    %c0_i32_0 = arith.constant 0 : i32
    %c0_i32_1 = arith.constant 0 : i32
    return %c0_i32, %c0_i32_0 : i32, i32
  }
  func.func @transform_7(%arg0: i32) -> (i32, i32) {
    %c0_i32 = arith.constant 0 : i32
    %c0_i32_0 = arith.constant 0 : i32
    %c0_i32_1 = arith.constant 0 : i32
    return %c0_i32, %c0_i32_0 : i32, i32
  }
  func.func @transform_8(%arg0: i32) -> (i32, i32, i32) {
    %c0_i32 = arith.constant 0 : i32
    %c0_i32_0 = arith.constant 0 : i32
    %c0_i32_1 = arith.constant 0 : i32
    return %arg0, %c0_i32, %c0_i32_0 : i32, i32, i32
  }
}

</mosaic_0001>

<bundles_post_ra>
// kernel: tpu_custom_call.1
= control target key start
LH: loop header
LB: loop body
LE: loop exit
PB: predicated region body
PF: predicated region fallthrough
CT: control target
= control target key end

     0   :  { %s1851_s0 = inlined_call_operand.hbm [shape: f32[2,8,128], index: 0, kind: input, shape index: {}]   ;;  %s1852_s1 = inlined_call_operand.hbm [shape: f32[2,16,128], index: 1, kind: input, shape index: {}]   ;;  %s1853_s2 = inlined_call_operand.hbm [shape: f32[128,128], index: 2, kind: input, shape index: {}]   ;;  %s1854_s3 = inlined_call_operand.vmem [shape: f32[1,128], index: 3, kind: input, shape index: {}]   ;;  %s1855_s4 = inlined_call_operand.hbm [shape: f32[128,128], index: 4, kind: input, shape index: {}]   ;;  %s1856_s5 = inlined_call_operand.vmem [shape: f32[1,128], index: 5, kind: input, shape index: {}]   ;;  %s1857_s6 = inlined_call_operand.hbm [shape: f32[128,128], index: 6, kind: input, shape index: {}]   ;;  %s1858_s7 = inlined_call_operand.vmem [shape: f32[1,128], index: 7, kind: input, shape index: {}]   ;;  %s1859_s8 = inlined_call_operand.hbm [shape: f32[2,8,128], index: 8, kind: output, shape index: {}]  }
   0x1   :  { %1866 = sst [smem:[#allocation17_spill]] %s1853_s2 }
   0x2   :  { %1867 = sst [smem:[#allocation18_spill]] %s1855_s4 }
   0x3   :  { %1868 = sst [smem:[#allocation19_spill]] %s1857_s6 }
   0x4   :  { %13 = vsyncpa [#allocation3], 0 }
   0x5   :  { %15 = vsyncpa [#allocation3 + $0x1], 0 }
   0x6   :  { %16 = vsyncpa [#allocation6], 0 }
   0x7   :  { %18 = vsyncpa [#allocation6 + $0x1], 0 }
   0x8   :  { %19 = vsyncpa [#allocation9], 0 }
   0x9   :  { %20 = vsyncpa [#allocation4], 0 }
   0xa   :  { %22 = vsyncpa [#allocation4 + $0x1], 0  ;;  %s1549_s27 = smov 0   ;;  %s1551_s28 = smov 0  }
   0xb   :  { %s1553_s29 = smov 0   ;;  %s1555_s30 = smov 0  }
   0xc LB: > { %s1570_s9 = sadd.s32 4294967295, %s1492_s30   ;;  %s987_s10 = sadd.s32 4294967294, %s1492_s30   ;;  %s1492_s30 = sphi %s1555_s30, %s1892_s30   ;;  %s1488_s29 = sphi %s1553_s29, %s1891_s29   ;;  %s1484_s28 = sphi %s1551_s28, %s1890_s28   ;;  %s1480_s27 = sphi %s1549_s27, %s1889_s27  }
   0xd   : > { %p48_p0 = scmp.ne.s32.totalorder %s1484_s28, %s1480_s27  ;;  %p1860_p1 = scmp.eq.s32.totalorder %s1570_s9, 0 }
   0xe   : > { %p224_p2 = scmp.eq.s32.totalorder %s1570_s9, 1  ;;  %p230_p3 = scmp.eq.s32.totalorder %s987_s10, 1 }
   0xf   : > { %p1579_p4 = por %p1860_p1, %p48_p0  ;;  %p988_p5 = scmp.ge.s32.totalorder %s1492_s30, 1 }
  0x10   : > { %p1584_p6 = por %p230_p3, %p48_p0  ;;  %p237_p7 = scmp.lt.s32.totalorder %s1492_s30, 3 }
  0x11   : > { %s1869_s11 = scalar_select %p1579_p4, 1, 0 }
  0x12   : > { %s1870_s12 = scalar_select %p1584_p6, 1, 0 }
  0x13   : > { %p1589_p8 = pnand %p988_p5, %p237_p7  ;;  %s1494_s14 = smov [#allocation7]  }
  0x14   : > { %s249_s15 = sshll.u32 %s1494_s14, 4  ;;  %s1495_s17 = smov [#allocation8]   ;;  %s250_s15 = int_to_ptr.vmem [resolvable:$true] %s249_s15 }
  0x15   : > { %s1871_s13 = scalar_select %p1589_p8, 1, 0 }
  0x16   : > { %p1210_p9 = pneg %p1589_p8  ;;  %s265_s18 = sshll.u32 %s1495_s17, 4  ;;  %s266_s18 = int_to_ptr.vmem [resolvable:$true] %s265_s18 }
  0x17   : > { %s1496_s19 = smov [#allocation10]   ;;  %s1293_s21 = scalar_lea.vmem %s250_s15, 2048 }
  0x18   : > { %p1598_p11 = pnand %p1210_p9, %p1860_p1  ;;  %s281_s20 = sshll.u32 %s1496_s19, 4  ;;  %s282_s20 = int_to_ptr.vmem [resolvable:$true] %s281_s20 }
  0x19   : > { %p1294_p13 = scmp.ne.s32.totalorder %s250_s15, %s1293_s21  ;;  %p1301_p5 = scmp.lt.s32.totalorder %s250_s15, %s250_s15 }
  0x1a   : > { %p1284_p12 = pneg %p1598_p11  ;;  %p1302_p7 = scmp.lt.s32.totalorder %s1293_s21, %s1293_s21 }
  0x1c   : > { %p1296_p0 = pnand %p1294_p13, %p1284_p12  ;;  %p1303_p9 = por %p1302_p7, %p1301_p5 }
  0x1e   : > { %p1297_p3 = pneg %p1296_p0 }
  0x20   : > { %p1304_p10 = pnand %p1303_p9, %p1297_p3 }
  0x22   : > { %1307 = shalt.err (!%p1304_p10)
}
  0x23   : > { %s1861_s22 = smov 128   ;;  %s1862_s23 = smov 8  }
  0x24   : > { %s1873_s2 = sld [smem:[#allocation17_spill]]  ;;  %s1319_s26 = scalar_lea.vmem %s266_s18, 2048 }
  0x25   : > { %p1320_p13 = scmp.ne.s32.totalorder %s266_s18, %s1319_s26  ;;  %p1327_p3 = scmp.lt.s32.totalorder %s266_s18, %s266_s18 }
  0x26   : > { %p1328_p10 = scmp.lt.s32.totalorder %s1319_s26, %s1319_s26 }
  0x27   : > { %p1322_p0 = pnand %p1320_p13, %p1284_p12 }
  0x28   : > { %p1329_p7 = por %p1328_p10, %p1327_p3 }
  0x29   : > { %p1323_p5 = pneg %p1322_p0 }
  0x2a   : > { %1213 = dma.hbm_to_vmem [thread:$0]  (!%p1598_p11), %s1873_s2, 2048, %s250_s15, [#allocation6], %s1861_s22, %s1861_s22, %s1862_s23  }
  0x2b   : > { %p1330_p9 = pnand %p1329_p7, %p1323_p5 }
  0x2d   : > { %1333 = shalt.err (!%p1330_p9)
}
  0x2e   : > { %s1874_s4 = sld [smem:[#allocation18_spill]]  ;;  %s1345_s15 = scalar_lea.vmem %s282_s20, 2048 }
  0x2f   : > { %p1346_p1 = scmp.ne.s32.totalorder %s282_s20, %s1345_s15  ;;  %p1353_p3 = scmp.lt.s32.totalorder %s282_s20, %s282_s20 }
  0x30   : > { %p1354_p5 = scmp.lt.s32.totalorder %s1345_s15, %s1345_s15 }
  0x31   : > { %p1348_p13 = pnand %p1346_p1, %p1284_p12 }
  0x32   : > { %p1355_p10 = por %p1354_p5, %p1353_p3 }
  0x33   : > { %p1349_p0 = pneg %p1348_p13 }
  0x34   : > { %1216 = dma.hbm_to_vmem [thread:$0]  (!%p1598_p11), %s1874_s4, 2048, %s266_s18, [#allocation9], %s1861_s22, %s1861_s22, %s1862_s23  }
  0x35   : > { %p1356_p7 = pnand %p1355_p10, %p1349_p0 }
  0x37   : > { %1359 = shalt.err (!%p1356_p7)
}
  0x38   : > { %s1875_s6 = sld [smem:[#allocation19_spill]]  ;;  %s1638_s18 = sadd.s32 1, %s1492_s30  }
  0x39   : > { %s32_s16 = ssub.s32 %s1492_s30, %s1638_s18  ;;  %s35_s21 = sadd.s32 1, %s1488_s29 }
  0x3a   : > { %p33_p1 = scmp.eq.s32.totalorder %s32_s16, 0  ;;  %p42_p12 = scmp.ne.s32.totalorder %s1488_s29, %s1484_s28 }
  0x3b   : > { %p43_p9 = scmp.eq.s32.totalorder %s1492_s30, 0  ;;  %p1234_p13 = scmp.lt.s32.totalorder %s1492_s30, 2 }
  0x3c   : > { %s1648_s24 = scalar_select %p33_p1, %s1488_s29, %s35_s21  }
  0x3d   : > { %p44_p0 = por %p43_p9, %p42_p12  ;;  %p1652_p3 = por %p224_p2, %p42_p12 }
  0x3e   : > { %1219 = dma.hbm_to_vmem [thread:$0]  (!%p1598_p11), %s1875_s6, 2048, %s282_s20, [#allocation9], %s1861_s22, %s1861_s22, %s1862_s23  }
  0x3f   : > { %s1876_s25 = scalar_select %p1652_p3, 1, 0 }
  0x40   : > { %s1657_s26 = sand.u32 1, %s1488_s29   ;;  %s994_s20 = sshll.u32 %s1492_s30, 7 }
  0x41   : > { %s993_s10 = sshll.u32 %s1657_s26, 3  ;;  %s1664_s17 = scalar_lea.hbm %s1851_s0, %s994_s20 }
  0x42   : > { %s302_s19 = scalar_lea.vmem [#allocation2], %s993_s10  ;;  %p1666_p2 = pnand %p1234_p13, %p44_p0 }
  0x43   : > { %s309_s16 = sshll.u32 %s302_s19, 4  ;;  %s995_s22 = sshll.u32 %s1657_s26, 4  ;;  %s310_s16 = int_to_ptr.vmem [resolvable:$true] %s309_s16 }
  0x44   : > { %s299_s23 = scalar_lea.sflag [#allocation3], %s1657_s26  ;;  %s1360_s2 = scalar_lea.hbm %s1664_s17, 128 }
  0x45   : > { %p1361_p11 = scmp.ne.s32.totalorder %s1664_s17, %s1360_s2  ;;  %p1362_p5 = pneg %p1666_p2 }
  0x46   : > { %s1365_s14 = scalar_lea.hbm %s1851_s0, 256  ;;  %p1366_p1 = scmp.lt.s32.totalorder %s1664_s17, %s1851_s0 }
  0x47   : > { %p1363_p10 = pnand %p1362_p5, %p1361_p11  ;;  %p1367_p12 = scmp.lt.s32.totalorder %s1365_s14, %s1360_s2 }
  0x49   : > { %p1364_p7 = pneg %p1363_p10  ;;  %p1368_p9 = por %p1367_p12, %p1366_p1 }
  0x4b   : > { %p1369_p13 = pnand %p1368_p9, %p1364_p7 }
  0x4d   : > { %1372 = shalt.err (!%p1369_p13)
}
  0x4e   : > { %s1373_s26 = scalar_lea.vmem %s310_s16, 128  ;;  %s1499_s4 = smov [#allocation2]  }
  0x4f   : > { %p1374_p0 = scmp.ne.s32.totalorder %s310_s16, %s1373_s26  ;;  %s1378_s6 = sshll.u32 %s1499_s4, 4  ;;  %s1379_s6 = int_to_ptr.vmem [resolvable:$false] %s1378_s6 }
  0x50   : > { %s1380_s20 = scalar_lea.vmem %s1379_s6, 256  ;;  %p1381_p10 = scmp.lt.s32.totalorder %s310_s16, %s1379_s6 }
  0x51   : > { %p1376_p6 = pnand %p1374_p0, %p1362_p5  ;;  %p1382_p3 = scmp.lt.s32.totalorder %s1380_s20, %s1373_s26 }
  0x53   : > { %p1377_p11 = pneg %p1376_p6  ;;  %p1383_p4 = por %p1382_p3, %p1381_p10 }
  0x55   : > { %p1384_p8 = pnand %p1383_p4, %p1377_p11 }
  0x57   : > { %1387 = shalt.err (!%p1384_p8)
}
  0x58   : > { %1223 = dma.hbm_to_vmem [thread:$0]  (!%p1666_p2), %s1664_s17, 128, %s310_s16, %s299_s23  }
  0x59   : > { %s320_s2 = scalar_lea.vmem [#allocation5], %s995_s22  ;;  %s316_s14 = sand.u32 1, %s1492_s30  }
  0x5a   : > { %s327_s10 = sshll.u32 %s320_s2, 4  ;;  %s1013_s4 = sshll.u32 %s1492_s30, 8  ;;  %s1693_s10 = int_to_ptr.vmem [resolvable:$true] %s327_s10 }
  0x5b   : > { %s1699_s6 = scalar_lea.hbm %s1852_s1, %s1013_s4  ;;  %s317_s26 = scalar_lea.sflag [#allocation6], %s316_s14 }
  0x5c   : > { %s1388_s20 = scalar_lea.hbm %s1699_s6, 256  ;;  %s1393_s17 = scalar_lea.hbm %s1852_s1, 512 }
  0x5d   : > { %p1389_p4 = scmp.ne.s32.totalorder %s1699_s6, %s1388_s20  ;;  %p1394_p3 = scmp.lt.s32.totalorder %s1699_s6, %s1852_s1 }
  0x5e   : > { %p1395_p7 = scmp.lt.s32.totalorder %s1393_s17, %s1388_s20 }
  0x5f   : > { %p1391_p6 = pnand %p1389_p4, %p1362_p5 }
  0x60   : > { %p1396_p1 = por %p1395_p7, %p1394_p3 }
  0x61   : > { %p1392_p8 = pneg %p1391_p6 }
  0x63   : > { %p1397_p12 = pnand %p1396_p1, %p1392_p8 }
  0x65   : > { %1400 = shalt.err (!%p1397_p12)
}
  0x66   : > { %s1401_s14 = scalar_lea.vmem %s1693_s10, 256  ;;  %s1500_s4 = smov [#allocation5]  }
  0x67   : > { %p1402_p9 = scmp.ne.s32.totalorder %s1693_s10, %s1401_s14  ;;  %s1406_s15 = sshll.u32 %s1500_s4, 4  ;;  %s1407_s15 = int_to_ptr.vmem [resolvable:$false] %s1406_s15 }
  0x68   : > { %s1408_s19 = scalar_lea.vmem %s1407_s15, 512  ;;  %p1409_p11 = scmp.lt.s32.totalorder %s1693_s10, %s1407_s15 }
  0x69   : > { %p1404_p13 = pnand %p1402_p9, %p1362_p5  ;;  %p1410_p10 = scmp.lt.s32.totalorder %s1408_s19, %s1401_s14 }
  0x6b   : > { %p1405_p0 = pneg %p1404_p13  ;;  %p1411_p4 = por %p1410_p10, %p1409_p11 }
  0x6d   : > { %p1412_p6 = pnand %p1411_p4, %p1405_p0 }
  0x6f   : > { %1415 = shalt.err (!%p1412_p6)
}
  0x70   : > { %s1878_s20 = smov 8   ;;  %s1879_s22 = smov 128  }
  0x71   : > { %1226 = dma.hbm_to_vmem [thread:$0]  (!%p1666_p2), %s1699_s6, 256, %s1693_s10, %s317_s26, %s1879_s22, %s1879_s22, %s1878_s20  }
  0x72   : > { %p1880_p5 = scmp.ne.s32.totalorder %s1871_s13, 0 }
  0x73   : > { %s1729_s23 = sand.u32 (!%p1880_p5), 1, %s1484_s28   ;;  %p1881_p8 = scmp.ne.s32.totalorder (!%p1880_p5), %s1869_s11, 0 }
  0x74   : > { %339 = sbr.rel (%p1880_p5) target bundleno = 1079 (0x437), region = 52  ;;  %s999_s17 = sshll.u32 (!%p1880_p5), %s1729_s23, 3 }
  0x75   : > { %s342_s16 = scalar_lea.sflag (!%p1880_p5), [#allocation3], %s1729_s23  ;;  %s1735_s21 = scalar_lea.vmem (!%p1880_p5), [#allocation2], %s999_s17 }
  0x79   : > { %1459 = dma.done.wait (%p1881_p8), %s342_s16, 128  }
  0x7a   : > { %1461 = vsyncadd (%p1881_p8), %s342_s16, 4294967168  ;;  %s350_s13 = sand.u32 1, %s1570_s9   ;;  %s1000_s10 = sshll.u32 %s1729_s23, 4 }
  0x7b   : > { %s351_s6 = scalar_lea.sflag [#allocation6], %s350_s13  ;;  %s1743_s26 = scalar_lea.vmem [#allocation5], %s1000_s10 }
  0x7c   : > { %1463 = dma.done.wait (%p1881_p8), %s351_s6, 256  }
  0x7d   : > { %1465 = vsyncadd (%p1881_p8), %s351_s6, 4294967040  ;;  %p1882_p2 = scmp.eq.s32.totalorder %s1570_s9, 0 }
  0x7f   : > { %1467 = dma.done.wait (%p1882_p2), [#allocation6], 2048   ;;  %p1883_p3 = pmov %p1882_p2 }
  0x80   : > { %p1884_p7 = pmov %p1882_p2 }
  0x81   : > { %1469 = vsyncadd (%p1883_p3), [#allocation6], 4294965248 }
  0x82   : > { %1471 = dma.done.wait (%p1884_p7), [#allocation9], 4096   ;;  %p1885_p1 = pmov %p1882_p2 }
  0x83   : > { %v1501_v0 = vmov 0.0   ;;  %vm1502_vm0 = vmmov 0   ;;  %v515_v1 = vld [vmem:[#allocation8 + $0x78] sm:$0xff]  ;;  %v514_v2 = vld [vmem:[#allocation8 + $0x70] sm:$0xff]  ;;  %v513_v5 = vld [vmem:[#allocation8 + $0x68] sm:$0xff]  ;;  %vm766_vm1 = vcmask 130048  }
  0x84   : > { %1473 = vsyncadd (%p1885_p1), [#allocation9], 4294963200  ;;  %1073 = vmatprep.subr.mxu0 %v1501_v0  ;;  %1105 = vmatprep.mubr.msk.f32.mxu0 %vm1502_vm0, %v1501_v0  ;;  %v422_v3 = vld [vmem:[#allocation7 + $0x78] sm:$0xff]  ;;  %v421_v4 = vld [vmem:[#allocation7 + $0x70] sm:$0xff]  ;;  %s403_s20 = scalar_lea.vmem [#allocation11], %s999_s17  ;;  %s1010_s16 = sshll.u32 %s1570_s9, 7 }
  0x85   : > { %1108 = vmatprep.subr.mxu1 %v515_v1  ;;  %1074 = vmatpush3.msra.mxu0 %v422_v3  ;;  %v420_v6 = vld [vmem:[#allocation7 + $0x68] sm:$0xff]  ;;  %v512_v7 = vld [vmem:[#allocation8 + $0x60] sm:$0xff]  ;;  %v511_v9 = vld [vmem:[#allocation8 + $0x58] sm:$0xff]  ;;  %s866_s22 = sshll.u32 %s403_s20, 4  ;;  %s1810_s10 = scalar_lea.hbm %s1859_s8, %s1010_s16  ;;  %s1805_s22 = int_to_ptr.vmem [resolvable:$true] %s866_s22 }
  0x86   : > { %1109 = vmatpush3.msra.mxu1 %v515_v1  ;;  %1075 = vmatprep.subr.mxu0 %v1501_v0  ;;  %v419_v8 = vld [vmem:[#allocation7 + $0x60] sm:$0xff]  ;;  %v418_v10 = vld [vmem:[#allocation7 + $0x58] sm:$0xff]  ;;  %v510_v11 = vld [vmem:[#allocation8 + $0x50] sm:$0xff]  ;;  %s853_s6 = scalar_lea.sflag [#allocation4], %s1729_s23  ;;  %p1886_p9 = scmp.ne.s32.totalorder %s1876_s25, 0 }
  0x87   : > { %1110 = vmatprep.subr.mxu1 %v514_v2  ;;  %1076 = vmatpush3.msra.mxu0 %v421_v4  ;;  %v417_v12 = vld [vmem:[#allocation7 + $0x50] sm:$0xff]  ;;  %v509_v13 = vld [vmem:[#allocation8 + $0x48] sm:$0xff]  ;;  %v508_v15 = vld [vmem:[#allocation8 + $0x40] sm:$0xff]  ;;  %s1503_s9 = smov [#allocation11]  }
  0x88   : > { %1111 = vmatpush3.msra.mxu1 %v514_v2  ;;  %1077 = vmatprep.subr.mxu0 %v1501_v0  ;;  %v416_v14 = vld [vmem:[#allocation7 + $0x48] sm:$0xff]  ;;  %v415_v16 = vld [vmem:[#allocation7 + $0x40] sm:$0xff]  ;;  %v507_v17 = vld [vmem:[#allocation8 + $0x38] sm:$0xff]  ;;  %s1420_s17 = sshll.u32 %s1503_s9, 4  ;;  %s1421_s17 = int_to_ptr.vmem [resolvable:$false] %s1420_s17 }
  0x89   : > { %1112 = vmatprep.subr.mxu1 %v513_v5  ;;  %1078 = vmatpush3.msra.mxu0 %v420_v6  ;;  %v414_v18 = vld [vmem:[#allocation7 + $0x38] sm:$0xff]  ;;  %v506_v19 = vld [vmem:[#allocation8 + $0x30] sm:$0xff]  ;;  %v505_v21 = vld [vmem:[#allocation8 + $0x28] sm:$0xff]  ;;  %s1422_s11 = scalar_lea.vmem %s1421_s17, 256  ;;  %p1423_p11 = scmp.lt.s32.totalorder %s1805_s22, %s1421_s17 }
  0x8a   : > { %1113 = vmatpush3.msra.mxu1 %v513_v5  ;;  %1079 = vmatprep.subr.mxu0 %v1501_v0  ;;  %v413_v20 = vld [vmem:[#allocation7 + $0x30] sm:$0xff]  ;;  %v412_v22 = vld [vmem:[#allocation7 + $0x28] sm:$0xff]  ;;  %v504_v23 = vld [vmem:[#allocation8 + $0x20] sm:$0xff] }
  0x8b   : > { %1114 = vmatprep.subr.mxu1 %v512_v7  ;;  %1080 = vmatpush3.msra.mxu0 %v419_v8  ;;  %v411_v24 = vld [vmem:[#allocation7 + $0x20] sm:$0xff]  ;;  %v503_v25 = vld [vmem:[#allocation8 + $0x18] sm:$0xff]  ;;  %v502_v27 = vld [vmem:[#allocation8 + $0x10] sm:$0xff] }
  0x8c   : > { %1115 = vmatpush3.msra.mxu1 %v512_v7  ;;  %1081 = vmatprep.subr.mxu0 %v1501_v0  ;;  %v410_v26 = vld [vmem:[#allocation7 + $0x18] sm:$0xff]  ;;  %v405_v28 = vld [vmem:[%s1743_s26] sm:$0xff]  ;;  %v501_v29 = vld [vmem:[#allocation8 + $0x8] sm:$0xff] }
  0x8d   : > { %1116 = vmatprep.subr.mxu1 %v511_v9  ;;  %1082 = vmatpush3.msra.mxu0 %v418_v10  ;;  %v409_v30 = vld [vmem:[#allocation7 + $0x10] sm:$0xff]  ;;  %v500_v31 = vld [vmem:[#allocation8] sm:$0xff]  ;;  %v408_v32 = vld [vmem:[#allocation7 + $0x8] sm:$0xff] }
  0x8e   : > { %1117 = vmatpush3.msra.mxu1 %v511_v9  ;;  %1083 = vmatprep.subr.mxu0 %v1501_v0  ;;  %v1775_v33 = vld [vmem:[%s1743_s26 + $0x8] sm:$0xff]  ;;  %v407_v34 = vld [vmem:[#allocation7] sm:$0xff]  ;;  %v1006_v36 = vld [vmem:[%s1856_s5] ss:$0 sm:$0xff]  ;;  %s1416_s26 = scalar_lea.vmem %s1805_s22, 128 }
  0x8f   : > { %1118 = vmatprep.subr.mxu1 %v510_v11  ;;  %1084 = vmatpush3.msra.mxu0 %v417_v12  ;;  %v404_v35 = vld [vmem:[%s1735_s21] sm:$0xff]  ;;  %v611_v47 = vld [vmem:[#allocation10 + $0x68] sm:$0xff]  ;;  %v610_v48 = vld [vmem:[#allocation10 + $0x60] sm:$0xff]  ;;  %p1417_p12 = scmp.ne.s32.totalorder %s1805_s22, %s1416_s26  ;;  %p1424_p10 = scmp.lt.s32.totalorder %s1422_s11, %s1416_s26 }
  0x90   : > { %1119 = vmatpush3.msra.mxu1 %v510_v11  ;;  %1085 = vmatprep.subr.mxu0 %v1501_v0  ;;  %v1005_v41 = vld [vmem:[%s1854_s3] ss:$0 sm:$0xff]  ;;  %v613_v45 = vld [vmem:[#allocation10 + $0x78] sm:$0xff]  ;;  %v607_v51 = vld [vmem:[#allocation10 + $0x48] sm:$0xff] }
  0x91   : > { %1120 = vmatprep.subr.mxu1 %v509_v13  ;;  %1086 = vmatpush3.msra.mxu0 %v416_v14  ;;  %v612_v46 = vld [vmem:[#allocation10 + $0x70] sm:$0xff]  ;;  %v609_v49 = vld [vmem:[#allocation10 + $0x58] sm:$0xff]  ;;  %v606_v52 = vld [vmem:[#allocation10 + $0x40] sm:$0xff]  ;;  %p1418_p13 = pnand %p1417_p12, %p1886_p9  ;;  %p1425_p4 = por %p1424_p10, %p1423_p11 }
  0x92   : > { %1121 = vmatpush3.msra.mxu1 %v509_v13  ;;  %1087 = vmatprep.subr.mxu0 %v1501_v0  ;;  %v608_v50 = vld [vmem:[#allocation10 + $0x50] sm:$0xff]  ;;  %v605_v53 = vld [vmem:[#allocation10 + $0x38] sm:$0xff]  ;;  %v603_v55 = vld [vmem:[#allocation10 + $0x28] sm:$0xff] }
  0x93   : > { %1122 = vmatprep.subr.mxu1 %v508_v15  ;;  %1088 = vmatpush3.msra.mxu0 %v415_v16  ;;  %v604_v54 = vld [vmem:[#allocation10 + $0x30] sm:$0xff]  ;;  %v602_v56 = vld [vmem:[#allocation10 + $0x20] sm:$0xff]  ;;  %v601_v57 = vld [vmem:[#allocation10 + $0x18] sm:$0xff]  ;;  %p1419_p0 = pneg %p1418_p13 }
  0x94   : > { %1123 = vmatpush3.msra.mxu1 %v508_v15  ;;  %1089 = vmatprep.subr.mxu0 %v1501_v0  ;;  %v600_v58 = vld [vmem:[#allocation10 + $0x10] sm:$0xff]  ;;  %v599_v59 = vld [vmem:[#allocation10 + $0x8] sm:$0xff]  ;;  %v598_v60 = vld [vmem:[#allocation10] sm:$0xff] }
  0x95   : > { %1124 = vmatprep.subr.mxu1 %v507_v17  ;;  %1090 = vmatpush3.msra.mxu0 %v414_v18  ;;  %v1007_v7 = vld [vmem:[%s1858_s7] ss:$0 sm:$0xff]  ;;  %p1426_p6 = pnand %p1425_p4, %p1419_p0 }
  0x96   : > { %1125 = vmatpush3.msra.mxu1 %v507_v17  ;;  %1091 = vmatprep.subr.mxu0 %v1501_v0 }
  0x97   : > { %1126 = vmatprep.subr.mxu1 %v506_v19  ;;  %1092 = vmatpush3.msra.mxu0 %v413_v20 }
  0x98   : > { %1127 = vmatpush3.msra.mxu1 %v506_v19  ;;  %1093 = vmatprep.subr.mxu0 %v1501_v0 }
  0x99   : > { %1128 = vmatprep.subr.mxu1 %v505_v21  ;;  %1094 = vmatpush3.msra.mxu0 %v412_v22 }
  0x9a   : > { %1129 = vmatpush3.msra.mxu1 %v505_v21  ;;  %1095 = vmatprep.subr.mxu0 %v1501_v0 }
  0x9b   : > { %1130 = vmatprep.subr.mxu1 %v504_v23  ;;  %1096 = vmatpush3.msra.mxu0 %v411_v24 }
  0x9c   : > { %1131 = vmatpush3.msra.mxu1 %v504_v23  ;;  %1097 = vmatprep.subr.mxu0 %v1501_v0 }
  0x9d   : > { %1132 = vmatprep.subr.mxu1 %v503_v25  ;;  %1098 = vmatpush3.msra.mxu0 %v410_v26 }
  0x9e   : > { %1133 = vmatpush3.msra.mxu1 %v503_v25  ;;  %1099 = vmatprep.subr.mxu0 %v1501_v0 }
  0x9f   : > { %1134 = vmatprep.subr.mxu1 %v502_v27  ;;  %1140 = vmatprep.mubr.f32.mxu1 %v405_v28 }
  0xa0   : > { %1135 = vmatpush3.msra.mxu1 %v502_v27  ;;  %1100 = vmatpush3.msra.mxu0 %v409_v30 }
  0xa1   : > { %1136 = vmatprep.subr.mxu1 %v501_v29  ;;  %1101 = vmatprep.subr.mxu0 %v1501_v0 }
  0xa2   : > { %1137 = vmatpush3.msra.mxu1 %v501_v29  ;;  %1102 = vmatpush3.msra.mxu0 %v408_v32 }
  0xa3   : > { %1138 = vmatprep.subr.mxu1 %v500_v31  ;;  %1103 = vmatprep.subr.mxu0 %v1501_v0 }
  0xa4   : > { %1139 = vmatpush3.msra.mxu1 %v500_v31  ;;  %1104 = vmatpush3.msra.mxu0 %v407_v34 }
  0xa5   : > { %1141 = vmatmul.mubr.f32.vlgmr.msra.gmra.mxu1 %v1775_v33  ;;  %1106 = vmatmul.mubr.f32.vlgmr.msra.gmra.mxu0 %v404_v35 }
  0xa6   : > { %1178 = vmatprep.subr.mxu1 %v1501_v0  ;;  %1182 = vmatprep.mubr.msk.f32.mxu1 %vm1502_vm0, %v1501_v0 }
  0xa7   : > { %1175 = vmatprep.mubr.f32.mxu0 %v405_v28  ;;  %1143 = vmatprep.subr.mxu0 %v613_v45 }
  0xa8   : > { %1144 = vmatpush3.msra.mxu0 %v613_v45 }
  0xa9   : > { %1145 = vmatprep.subr.mxu0 %v612_v46 }
  0xaa   : > { %1146 = vmatpush3.msra.mxu0 %v612_v46 }
  0xab   : > { %1147 = vmatprep.subr.mxu0 %v611_v47 }
  0xac   : > { %1148 = vmatpush3.msra.mxu0 %v611_v47 }
  0xad   : > { %1149 = vmatprep.subr.mxu0 %v610_v48 }
  0xae   : > { %1150 = vmatpush3.msra.mxu0 %v610_v48 }
  0xaf   : > { %1151 = vmatprep.subr.mxu0 %v609_v49 }
  0xb0   : > { %1152 = vmatpush3.msra.mxu0 %v609_v49 }
  0xb1   : > { %1153 = vmatprep.subr.mxu0 %v608_v50 }
  0xb2   : > { %1154 = vmatpush3.msra.mxu0 %v608_v50 }
  0xb3   : > { %1155 = vmatprep.subr.mxu0 %v607_v51 }
  0xb4   : > { %1156 = vmatpush3.msra.mxu0 %v607_v51 }
  0xb5   : > { %1157 = vmatprep.subr.mxu0 %v606_v52 }
  0xb6   : > { %1158 = vmatpush3.msra.mxu0 %v606_v52 }
  0xb7   : > { %1159 = vmatprep.subr.mxu0 %v605_v53 }
  0xb8   : > { %1160 = vmatpush3.msra.mxu0 %v605_v53 }
  0xb9   : > { %1161 = vmatprep.subr.mxu0 %v604_v54 }
  0xba   : > { %1162 = vmatpush3.msra.mxu0 %v604_v54 }
  0xbb   : > { %1163 = vmatprep.subr.mxu0 %v603_v55 }
  0xbc   : > { %1164 = vmatpush3.msra.mxu0 %v603_v55 }
  0xbd   : > { %1165 = vmatprep.subr.mxu0 %v602_v56 }
  0xbe   : > { %1166 = vmatpush3.msra.mxu0 %v602_v56 }
  0xbf   : > { %1167 = vmatprep.subr.mxu0 %v601_v57 }
  0xc0   : > { %1168 = vmatpush3.msra.mxu0 %v601_v57 }
  0xc1   : > { %1169 = vmatprep.subr.mxu0 %v600_v58 }
  0xc2   : > { %1170 = vmatpush3.msra.mxu0 %v600_v58 }
  0xc3   : > { %1171 = vmatprep.subr.mxu0 %v599_v59 }
  0xc4   : > { %1172 = vmatpush3.msra.mxu0 %v599_v59 }
  0xc5   : > { %1173 = vmatprep.subr.mxu0 %v598_v60 }
  0xc6   : > { %1174 = vmatpush3.msra.mxu0 %v598_v60 }
  0xc7   : > { %1176 = vmatmul.mubr.f32.vlgmr.msra.gmra.mxu0 %v1775_v33 }
 0x165   : > { %v1142_v37 = vpop.f32.mrf.mxu1  ;;  %v496_v39 = vpop.f32.mrf.mxu0 }
 0x166   : > { %v595_v38 = vadd.f32 %v1142_v37, %v1006_v36  ;;  %v497_v44 = vadd.f32 %v1005_v41, %v496_v39 }
 0x167   : > { %v589_v40 = vpop.f32.mrf.mxu1  ;;  %v1107_v42 = vpop.f32.mrf.mxu0 }
 0x168   : > { %1179 = vmatpush3.xpose.msra.mxu1 %v595_v38  ;;  %v590_v43 = vadd.f32 %v1006_v36, %v589_v40 }
 0x169   : > { %1180 = vmatprep.subr.mxu1 %v1501_v0 }
 0x16c   : > { %1181 = vmatpush3.xpose.msra.mxu1 %v590_v43 }
 0x16d   : > { %1185 = vmatprep.subr.mxu1 %v1501_v0 }
 0x16f   : > { %1183 = vmatmul.mubr.f32.vlgmr.msra.gmra.mxu1 %v497_v44 }
 0x170   : > { %1189 = vmatprep.mubr.msk.f32.mxu1 %vm1502_vm0, %v1501_v0 }
 0x187   : > { %v1177_v6 = vpop.f32.mrf.mxu0 }
 0x188   : > { %v693_v8 = vadd.f32 %v1177_v6, %v1007_v7 }
 0x189   : > { %v687_v9 = vpop.f32.mrf.mxu0 }
 0x18a   : > { %v688_v10 = vadd.f32 %v1007_v7, %v687_v9  ;;  %1186 = vmatpush3.msra.mxu1 %v693_v8 }
 0x18b   : > { %1187 = vmatprep.subr.mxu1 %v1501_v0 }
 0x18c   : > { %1188 = vmatpush3.msra.mxu1 %v688_v10 }
 0x22f   : > { %v762_v61 = vpop.f32.mrf.mxu1 }
 0x230   : > { %v767_v62 = vsel %vm766_vm1, %v762_v61, -inf }
 0x231   : > { %768 = vmax.xlane.f32.xlu0 %v767_v62  ;;  %v1184_v63 = vpop.f32.mrf.mxu1 }
 0x2ba   : > { %v769_v1 = vpop.xlane.xlu0 %768 }
 0x2bb   : > { %v770_v2 = vsub.f32 %v762_v61, %v769_v1 }
 0x2bd   : > { %v771_v3 = vmul.f32 1.442695, %v770_v2 }
 0x2bf   : > { %1278 = vpow2.f32 %v771_v3 }
 0x2cc   : > { %v1279_v4 = vpop.eup %1278 }
 0x2cd   : > { %v773_v5 = vsel %vm766_vm1, %v1279_v4, 0.0 }
 0x2ce   : > { %774 = vadd.xlane.f32.xlu0 %v773_v5 }
 0x357   : > { %v775_v11 = vpop.xlane.xlu0 %774 }
 0x358   : > { %1280 = vrcp.f32 %v775_v11 }
 0x365   : > { %v1281_v12 = vpop.eup %1280 }
 0x366   : > { %v777_v13 = vmul.f32 %v1281_v12, %v1279_v4 }
 0x368   : > { %1190 = vmatmul.mubr.msk.f32.vlgmr.msra.gmra.mxu1 %vm766_vm1, %v777_v13 }
 0x428   : > { %v847_v0 = vpop.f32.mrf.mxu1 }
 0x429   : > { %851 = vst [vmem:[%s403_s20] sm:$0xff] %v847_v0 }
 0x42a   : > { %v1191_v14 = vpop.f32.mrf.mxu1 }
 0x42b   : > { %1429 = shalt.err (!%p1426_p6)
}
 0x42c   : > { %s1430_s2 = scalar_lea.hbm %s1810_s10, 128  ;;  %s1434_s4 = scalar_lea.hbm %s1859_s8, 256 }
 0x42d   : > { %p1431_p5 = scmp.ne.s32.totalorder %s1810_s10, %s1430_s2  ;;  %p1435_p3 = scmp.lt.s32.totalorder %s1810_s10, %s1859_s8 }
 0x42e   : > { %p1436_p7 = scmp.lt.s32.totalorder %s1434_s4, %s1430_s2 }
 0x42f   : > { %p1432_p8 = pnand %p1431_p5, %p1886_p9 }
 0x430   : > { %p1437_p1 = por %p1436_p7, %p1435_p3 }
 0x431   : > { %p1433_p2 = pneg %p1432_p8 }
 0x433   : > { %p1438_p12 = pnand %p1437_p1, %p1433_p2 }
 0x435   : > { %1441 = shalt.err (!%p1438_p12)
}
 0x436   : > { %1208 = dma.vmem_to_hbm [thread:$0]  (%p1886_p9), %s1805_s22, 128, %s1810_s10, %s853_s6  }
 0x437 PF: > { %s878_s20 = sand.u32 1, %s1480_s27   ;;  %p1887_p13 = scmp.ne.s32.totalorder %s1870_s12, 0 }
 0x438   : > { %p1888_p0 = scmp.ge.s32.totalorder %s1492_s30, 2  ;;  %s879_s16 = scalar_lea.sflag [#allocation4], %s878_s20 }
 0x43a   : > { %p1228_p11 = pnand %p1888_p0, %p1887_p13 }
 0x43c   : > { %p1229_p10 = pneg %p1228_p11 }
 0x43e   : > { %1475 = dma.done.wait (%p1229_p10), %s879_s16, 128  }
 0x43f   : > { %1477 = vsyncadd (%p1229_p10), %s879_s16, 4294967168  ;;  %p25_p4 = scmp.ge.s32.totalorder %s1638_s18, 4   ;;  %s1889_s27 = smov %s1484_s28 }
 0x440   : > { %s1890_s28 = smov %s1488_s29  ;;  %s1891_s29 = smov %s1648_s24 }
 0x441   : > { %s1892_s30 = smov %s1638_s18  ;;  %27 = sbr.rel (!%p25_p4) target bundleno = 12 (0xc), region = 122 }
 0x446   :  { %884 = vsyncpa [#allocation3], 1 }
 0x447   :  { %886 = vsyncpa [#allocation3 + $0x1], 1 }
 0x448   :  { %887 = vsyncpa [#allocation6], 1 }
 0x449   :  { %889 = vsyncpa [#allocation6 + $0x1], 1 }
 0x44a   :  { %890 = vsyncpa [#allocation9], 1 }
 0x44b   :  { %891 = vsyncpa [#allocation4], 1 }
 0x44c   :  { %893 = vsyncpa [#allocation4 + $0x1], 1 }

</bundles_post_ra>
